<compile_context>
chip_gen: v7x
topology: tpu7x:2x2x1
jax: 0.10.0
libtpu: 0.0.40
codegen_flags: <defaults>
</compile_context>

<pallas_src>
import numpy as np
import jax
import jax.numpy as jnp
from jax.experimental import pallas as pl
from jax.experimental.pallas import tpu as pltpu


# ------------------------------ tiling helper --------------------------------
def _batches_per_tile(batch, length, target_lanes=8192):
    """Largest divisor nb of `batch` with nb*length % 128 == 0 and <= target_lanes.

    With the default target the whole (B*L) lane axis fits in one tile for any
    reasonably small model, collapsing the grid to a single step.  If B*L ever
    grows past the target, T grows first (per-lane double-buffered VMEM cost is
    only ~2*(C+P)*4 bytes) before grid steps are added.
    """
    best = None
    for nb in range(1, batch + 1):
        if batch % nb == 0 and (nb * length) % 128 == 0 and nb * length <= target_lanes:
            best = nb
    if best is None:
        best = batch  # single full-array block: always a legal BlockSpec
    return best


# ----------------------------- Pallas kernel ---------------------------------
def fft_conv_net(x, w_all, m2, conv_b, *, target_lanes=8192):
    """x: (B, C, L) f32 -> (B, P, L) f32.

    w_all: (4P, C) stacked [conv tap0'; tap1'; tap2'; M21'] with centering and
           the +x_last residual already folded in (see fold_params).
    m2:    (P, P) real matrix of the second FFT block.
    """
    B, C, L = x.shape
    P = m2.shape[0]
    assert w_all.shape == (4 * P, C)

    b2d = conv_b.reshape(P, 1)

    # Lane-dense layout: (B, C, L) -> (C, B*L), column index = b*L + l.
    x_flat = jnp.transpose(x, (1, 0, 2)).reshape(C, B * L)

    nb = _batches_per_tile(B, L, target_lanes)
    T = nb * L                      # lanes per grid step (batch-segment aligned)
    # Edge masking of the rolled conv taps is only correct if every tile is an
    # exact, batch-aligned multiple of L.
    assert T % L == 0, (T, L)
    grid = (B * L // T,)

    # Host-built edge masks: zero the zero-padded neighbour column of every
    # length-L segment (also kills the cross-batch / cross-tile wrap columns
    # that the lane rotation introduces).
    col = np.arange(B * L) % L
    mask0 = jnp.asarray((col != 0).astype(np.float32).reshape(1, B * L))
    mask2 = jnp.asarray((col != L - 1).astype(np.float32).reshape(1, B * L))

    def kernel(x_ref, w_ref, m2_ref, b_ref, m0_ref, m2m_ref, o_ref):
        xt = x_ref[...]                               # (C, T)

        # Single MXU pass: 3 conv taps + fused FFT path share the RHS.
        y = jnp.dot(w_ref[...], xt, preferred_element_type=jnp.float32)  # (4P, T)
        y0 = y[0:P, :]            # conv tap k=0 -> needs x[l-1]
        y1 = y[P:2 * P, :]        # conv tap k=1 -> x[l]
        y2 = y[2 * P:3 * P, :]    # conv tap k=2 -> needs x[l+1]
        y3 = y[3 * P:4 * P, :]    # M21 @ xc + x_last (fully folded)

        # +-1 column shifts via XLU lane rotation; multiply by the (1, T)
        # edge masks (sublane broadcast) to zero the padded edge columns.
        conv = (m0_ref[...] * pltpu.roll(y0, shift=1, axis=1)
                + y1
                + m2m_ref[...] * pltpu.roll(y2, shift=T - 1, axis=1)
                + b_ref[...])                          # (P, T)

        # out = M21 @ xc + x_last  +  M2 @ relu(conv)
        out = y3 + jnp.dot(m2_ref[...], jnp.maximum(conv, 0.0),
                           preferred_element_type=jnp.float32)
        o_ref[...] = out.astype(o_ref.dtype)

    flops = 2 * (4 * P * C + P * P) * B * L
    bytes_accessed = 4 * (C * B * L + P * B * L + 4 * P * C + P * P + P + 2 * B * L)

    out_flat = pl.pallas_call(
        kernel,
        out_shape=jax.ShapeDtypeStruct((P, B * L), x.dtype),
        grid_spec=pltpu.PrefetchScalarGridSpec(
            num_scalar_prefetch=0,
            grid=grid,
            in_specs=[
                pl.BlockSpec((C, T), lambda i: (0, i)),          # activations
                # Constant weights / bias / masks: index maps never change, so
                # the same tiny blocks stay resident across steps.
                pl.BlockSpec((4 * P, C), lambda i: (0, 0)),      # stacked taps + M21'
                pl.BlockSpec((P, P), lambda i: (0, 0)),          # M2
                pl.BlockSpec((P, 1), lambda i: (0, 0)),          # conv bias
                pl.BlockSpec((1, T), lambda i: (0, i)),          # tap-0 edge mask
                pl.BlockSpec((1, T), lambda i: (0, i)),          # tap-2 edge mask
            ],
            out_specs=pl.BlockSpec((P, T), lambda i: (0, i)),    # lane-dense output
        ),
        compiler_params=pltpu.CompilerParams(
            dimension_semantics=("parallel",)),
        cost_estimate=pl.CostEstimate(
            flops=flops, transcendentals=0, bytes_accessed=bytes_accessed),
    )(x_flat, w_all, m2, b2d, mask0, mask2)

    # (P, B*L) -> (B, P, L)
    return out_flat.reshape(P, B, L).transpose(1, 0, 2)


# --------------------------- parameter folding --------------------------------
def dft_matrix(n):
    k = np.arange(n)
    return np.exp(-2j * np.pi * np.outer(k, k) / n)


def idft_matrix(n):
    k = np.arange(n)
    return np.exp(2j * np.pi * np.outer(k, k) / n) / n


def fold_params(Wc1, Wc2, conv_w, C, P):
    """Fold FFT blocks to real matrices, pre-compose M21 = M2 @ M1, and fold
    the centering (x - x_last) plus the '+ x_last' residual into the matrices.
    All in float64; cast to f32 at the end."""
    Wc1 = np.asarray(Wc1, np.complex128)
    Wc2 = np.asarray(Wc2, np.complex128)
    conv_w = np.asarray(conv_w, np.float64)

    M1 = np.real(idft_matrix(P) @ Wc1.T @ dft_matrix(C))      # (P, C)
    M2 = np.real(idft_matrix(P) @ Wc2.T @ dft_matrix(P))      # (P, P)
    M21 = M2 @ M1                                             # (P, C)

    eC = np.zeros((1, C), np.float64)
    eC[0, C - 1] = 1.0

    def center_fold(A):
        # A @ (x - 1_C * x[C-1]) == (A - rowsum(A) e_{C-1}^T) @ x
        return A - A.sum(axis=1, keepdims=True) @ eC

    M21_f = center_fold(M21) + np.ones((P, 1)) @ eC           # +x_last residual
    taps = [center_fold(conv_w[:, :, k]) for k in range(3)]

    w_all = np.concatenate(taps + [M21_f], axis=0).astype(np.float32)   # (4P, C)
    return w_all, M2.astype(np.float32)


# ----------------------------- numpy reference --------------------------------
def reference_np(x, Wc1, Wc2, conv_w, conv_b):
    x = np.asarray(x, np.float64)
    Wc1 = np.asarray(Wc1, np.complex128)
    Wc2 = np.asarray(Wc2, np.complex128)
    conv_w = np.asarray(conv_w, np.float64)
    conv_b = np.asarray(conv_b, np.float64)
    B, C, L = x.shape
    P = Wc1.shape[1]

    x_last = x[:, -1:, :]
    xc = x - x_last
    xp = np.pad(xc, ((0, 0), (0, 0), (1, 1)))
    conv = np.broadcast_to(conv_b[None, :, None], (B, P, L)).copy()
    for k in range(3):
        conv += np.einsum('oc,bcl->bol', conv_w[:, :, k], xp[:, :, k:k + L])

    xft = np.fft.fft(xc, axis=1)
    oft = np.einsum('bix,io->box', xft, Wc1)
    o1 = np.real(np.fft.ifft(oft, axis=1, n=P))

    h = o1 + np.maximum(conv, 0.0)

    hft = np.fft.fft(h, axis=1)
    hft2 = np.einsum('bix,io->box', hft, Wc2)
    o2 = np.real(np.fft.ifft(hft2, axis=1, n=P))
    return o2 + x_last


# --------------------------------- main ----------------------------------------
if __name__ == "__main__":
    # B*L = 1024 lanes -> single lane-dense tile, grid = (1,).
    B, channels, pred_num, L = 16, 4, 8, 64   # F_channels is unused in forward

    key = jax.random.PRNGKey(0)
    k1, k2, k3, k4, k5, k6, k7 = jax.random.split(key, 7)

    # FFT1D_block weights: scale * rand(complex)
    scale1 = 1.0 / (channels * pred_num)
    Wc1 = scale1 * (jax.random.uniform(k1, (channels, pred_num))
                    + 1j * jax.random.uniform(k2, (channels, pred_num)))
    scale2 = 1.0 / (pred_num * pred_num)
    Wc2 = scale2 * (jax.random.uniform(k3, (pred_num, pred_num))
                    + 1j * jax.random.uniform(k4, (pred_num, pred_num)))

    # Conv1d(channels, pred_num, 3, 1, 1) parameters (synthetic deterministic init).
    conv_w = 0.5 * jax.random.uniform(k5, (pred_num, channels, 3),
                                      minval=-1.0, maxval=1.0)
    conv_b = 0.1 * jax.random.uniform(k6, (pred_num,), minval=-1.0, maxval=1.0)

    x = jax.random.normal(k7, (B, channels, L), dtype=jnp.float32)

    # Host-side folding: FFT blocks -> real matrices, centering + residual
    # folded, conv taps and M21 stacked into one (4P, C) LHS.
    Wc1_np = np.asarray(Wc1)
    Wc2_np = np.asarray(Wc2)
    w_all, M2f = fold_params(Wc1_np, Wc2_np, np.asarray(conv_w), channels, pred_num)

    out = fft_conv_net(
        x,
        jnp.asarray(w_all), jnp.asarray(M2f),
        conv_b.astype(jnp.float32),
    )
    out = jax.block_until_ready(out)

    ref = reference_np(x, Wc1_np, Wc2_np, np.asarray(conv_w), np.asarray(conv_b))
    assert out.shape == (B, pred_num, L), out.shape
    np.testing.assert_allclose(np.asarray(out), ref, rtol=2e-3, atol=2e-3)

    print("KERNEL_OK")
</pallas_src>

<mosaic_0001>
module attributes {stable_mosaic.version = 11 : i64} {
  func.func @kernel(%arg0: i32, %arg1: memref<4x1024xf32, #tpu.memory_space<vmem>>, %arg2: memref<32x4xf32, #tpu.memory_space<vmem>>, %arg3: memref<8x8xf32, #tpu.memory_space<vmem>>, %arg4: memref<8x1xf32, #tpu.memory_space<vmem>>, %arg5: memref<1x1024xf32, #tpu.memory_space<vmem>>, %arg6: memref<1x1024xf32, #tpu.memory_space<vmem>>, %arg7: memref<8x1024xf32, #tpu.memory_space<vmem>>) attributes {dimension_semantics = [#tpu.dimension_semantics<parallel>], iteration_bounds = array<i64: 1>, scalar_prefetch = 0 : i64, scratch_operands = 0 : i64, tpu.core_type = #tpu.core_type<tc>, window_params = [{transform_indices = @transform_0, window_bounds = array<i64: 4, 1024>}, {pipeline_mode = #tpu.pipeline_mode<synchronous>, transform_indices = @transform_1, window_bounds = array<i64: 32, 4>}, {pipeline_mode = #tpu.pipeline_mode<synchronous>, transform_indices = @transform_2, window_bounds = array<i64: 8, 8>}, {pipeline_mode = #tpu.pipeline_mode<synchronous>, transform_indices = @transform_3, window_bounds = array<i64: 8, 1>}, {transform_indices = @transform_4, window_bounds = array<i64: 1, 1024>}, {transform_indices = @transform_5, window_bounds = array<i64: 1, 1024>}, {transform_indices = @transform_6, window_bounds = array<i64: 8, 1024>}]} {
    %c0 = arith.constant 0 : index
    %c0_0 = arith.constant 0 : index
    %0 = vector.load %arg1[%c0, %c0_0] : memref<4x1024xf32, #tpu.memory_space<vmem>>, vector<4x1024xf32>
    %c0_1 = arith.constant 0 : index
    %c0_2 = arith.constant 0 : index
    %1 = vector.load %arg2[%c0_1, %c0_2] : memref<32x4xf32, #tpu.memory_space<vmem>>, vector<32x4xf32>
    %cst = arith.constant dense<0.000000e+00> : vector<32x1024xf32>
    %2 = tpu.matmul %1, %0, %cst {dimension_numbers = #tpu.dot_dimension_numbers<[1], [0], [0], [1], [0, 0, 1, 1], [], []>} : vector<32x4xf32>, vector<4x1024xf32>, vector<32x1024xf32> -> vector<32x1024xf32>
    %3 = vector.extract_strided_slice %2 {offsets = [0, 0], sizes = [8, 1024], strides = [1, 1]} : vector<32x1024xf32> to vector<8x1024xf32>
    %4 = vector.extract_strided_slice %2 {offsets = [8, 0], sizes = [8, 1024], strides = [1, 1]} : vector<32x1024xf32> to vector<8x1024xf32>
    %5 = vector.extract_strided_slice %2 {offsets = [16, 0], sizes = [8, 1024], strides = [1, 1]} : vector<32x1024xf32> to vector<8x1024xf32>
    %6 = vector.extract_strided_slice %2 {offsets = [24, 0], sizes = [8, 1024], strides = [1, 1]} : vector<32x1024xf32> to vector<8x1024xf32>
    %c0_3 = arith.constant 0 : index
    %c0_4 = arith.constant 0 : index
    %7 = vector.load %arg5[%c0_3, %c0_4] : memref<1x1024xf32, #tpu.memory_space<vmem>>, vector<1x1024xf32>
    %c1_i32 = arith.constant 1 : i32
    %8 = tpu.dynamic_rotate %3 by %c1_i32 dim 1 : vector<8x1024xf32>, i32 -> vector<8x1024xf32>
    %9 = vector.broadcast %7 : vector<1x1024xf32> to vector<8x1024xf32>
    %10 = arith.mulf %9, %8 : vector<8x1024xf32>
    %11 = arith.addf %10, %4 : vector<8x1024xf32>
    %c0_5 = arith.constant 0 : index
    %c0_6 = arith.constant 0 : index
    %12 = vector.load %arg6[%c0_5, %c0_6] : memref<1x1024xf32, #tpu.memory_space<vmem>>, vector<1x1024xf32>
    %c1023_i32 = arith.constant 1023 : i32
    %13 = tpu.dynamic_rotate %5 by %c1023_i32 dim 1 : vector<8x1024xf32>, i32 -> vector<8x1024xf32>
    %14 = vector.broadcast %12 : vector<1x1024xf32> to vector<8x1024xf32>
    %15 = arith.mulf %14, %13 : vector<8x1024xf32>
    %16 = arith.addf %11, %15 : vector<8x1024xf32>
    %c0_7 = arith.constant 0 : index
    %c0_8 = arith.constant 0 : index
    %17 = vector.load %arg4[%c0_7, %c0_8] : memref<8x1xf32, #tpu.memory_space<vmem>>, vector<8x1xf32>
    %18 = vector.broadcast %17 : vector<8x1xf32> to vector<8x1024xf32>
    %19 = arith.addf %16, %18 : vector<8x1024xf32>
    %c0_9 = arith.constant 0 : index
    %c0_10 = arith.constant 0 : index
    %20 = vector.load %arg3[%c0_9, %c0_10] : memref<8x8xf32, #tpu.memory_space<vmem>>, vector<8x8xf32>
    %cst_11 = arith.constant 0.000000e+00 : f32
    %21 = vector.broadcast %cst_11 : f32 to vector<8x1024xf32>
    %22 = arith.maximumf %19, %21 : vector<8x1024xf32>
    %cst_12 = arith.constant dense<0.000000e+00> : vector<8x1024xf32>
    %23 = tpu.matmul %20, %22, %cst_12 {dimension_numbers = #tpu.dot_dimension_numbers<[1], [0], [0], [1], [0, 0, 1, 1], [], []>} : vector<8x8xf32>, vector<8x1024xf32>, vector<8x1024xf32> -> vector<8x1024xf32>
    %24 = arith.addf %6, %23 : vector<8x1024xf32>
    %c0_13 = arith.constant 0 : index
    %c0_14 = arith.constant 0 : index
    %25 = vector.load %arg7[%c0_13, %c0_14] : memref<8x1024xf32, #tpu.memory_space<vmem>>, vector<8x1024xf32>
    tpu.vector_store %arg7[%c0_13, %c0_14], %24 {strides = array<i32>} : memref<8x1024xf32, #tpu.memory_space<vmem>>, vector<8x1024xf32>,
    return
  }
  func.func @transform_0(%arg0: i32) -> (i32, i32) {
    %c0_i32 = arith.constant 0 : i32
    %c0_i32_0 = arith.constant 0 : i32
    return %c0_i32, %arg0 : i32, i32
  }
  func.func @transform_1(%arg0: i32) -> (i32, i32) {
    %c0_i32 = arith.constant 0 : i32
    %c0_i32_0 = arith.constant 0 : i32
    %c0_i32_1 = arith.constant 0 : i32
    return %c0_i32, %c0_i32_0 : i32, i32
  }
  func.func @transform_2(%arg0: i32) -> (i32, i32) {
    %c0_i32 = arith.constant 0 : i32
    %c0_i32_0 = arith.constant 0 : i32
    %c0_i32_1 = arith.constant 0 : i32
    return %c0_i32, %c0_i32_0 : i32, i32
  }
  func.func @transform_3(%arg0: i32) -> (i32, i32) {
    %c0_i32 = arith.constant 0 : i32
    %c0_i32_0 = arith.constant 0 : i32
    %c0_i32_1 = arith.constant 0 : i32
    return %c0_i32, %c0_i32_0 : i32, i32
  }
  func.func @transform_4(%arg0: i32) -> (i32, i32) {
    %c0_i32 = arith.constant 0 : i32
    %c0_i32_0 = arith.constant 0 : i32
    return %c0_i32, %arg0 : i32, i32
  }
  func.func @transform_5(%arg0: i32) -> (i32, i32) {
    %c0_i32 = arith.constant 0 : i32
    %c0_i32_0 = arith.constant 0 : i32
    return %c0_i32, %arg0 : i32, i32
  }
  func.func @transform_6(%arg0: i32) -> (i32, i32) {
    %c0_i32 = arith.constant 0 : i32
    %c0_i32_0 = arith.constant 0 : i32
    return %c0_i32, %arg0 : i32, i32
  }
}

</mosaic_0001>

<bundles_post_ra>
// kernel: tpu_custom_call.1
= control target key start
LH: loop header
LB: loop body
LE: loop exit
PB: predicated region body
PF: predicated region fallthrough
CT: control target
= control target key end

     0   :  { %vm53_vm0 = vcmask 1043456   ;;  %v1005_v4 = vmov 0.0   ;;  %vm40_vm1 = vcmask 31744   ;;  %v1006_v8 = vmov 0   ;;  %s1240_s0 = inlined_call_operand.vmem [shape: f32[4,1024], index: 0, kind: input, shape index: {}]   ;;  %s1241_s1 = inlined_call_operand.vmem [shape: f32[32,4], index: 1, kind: input, shape index: {}]   ;;  %s1242_s2 = inlined_call_operand.vmem [shape: f32[8,8], index: 2, kind: input, shape index: {}]   ;;  %s1243_s3 = inlined_call_operand.vmem [shape: f32[8,1], index: 3, kind: input, shape index: {}]   ;;  %s1244_s4 = inlined_call_operand.vmem [shape: f32[1,1024], index: 4, kind: input, shape index: {}]   ;;  %s1245_s5 = inlined_call_operand.vmem [shape: f32[1,1024], index: 5, kind: input, shape index: {}]   ;;  %s1246_s6 = inlined_call_operand.hbm [shape: f32[8,1024], index: 6, kind: output, shape index: {}]  }
   0x1   :  { %v24_v0 = vld [vmem:[%s1240_s0] sm:$0xff]  ;;  %v25_v1 = vld [vmem:[%s1240_s0 + $0x8] sm:$0xff]  ;;  %134 = vmatprep.mubr.f32.mxu0 %v1005_v4  ;;  %223 = vmatprep.mubr.f32.mxu1 %v1005_v4  ;;  %v26_v6 = vld [vmem:[%s1240_s0 + $0x10] sm:$0xff] }
   0x2   :  { %v36_v2 = vcombine.high %v24_v0, %v24_v0  ;;  %v37_v3 = vcombine.high %v25_v1, %v25_v1  ;;  %v28_v5 = vld [vmem:[%s1241_s1] sm:$0xff]  ;;  %v27_v7 = vld [vmem:[%s1240_s0 + $0x18] sm:$0xff]  ;;  %976 = vset.pattern.permute.xlu0 %v1006_v8  ;;  %v38_v9 = vcombine.high %v26_v6, %v26_v6 }
   0x3   :  { %v39_v10 = vcombine.high %v27_v7, %v27_v7 }
   0x4   :  { %935 = vmatprep.subr.msk.mxu0 %vm53_vm0, %v36_v2  ;;  %941 = vmatprep.subr.msk.mxu1 %vm53_vm0, %v37_v3 }
   0x5   :  { %11 = vsyncpa [#allocation3], 0  ;;  %936 = vmatpush1.msk.msra.mxu0 %vm53_vm0, %v24_v0  ;;  %942 = vmatpush1.msk.msra.mxu1 %vm53_vm0, %v25_v1  ;;  %v29_v11 = vld [vmem:[%s1241_s1 + $0x8] sm:$0xff]  ;;  %v594_v12 = vld [vmem:[%s1243_s3] sm:$0xff]  ;;  %s1008_s13 = smov 127   ;;  %v443_v40 = vlaneseq  ;;  %vm617_vm4 = vcmask 64512  }
   0x6   :  { %937 = vmatmul.mubr.msk.f32.vlgmr.msra.gmra.mrb[0].mxu0 %vm40_vm1, %v28_v5  ;;  %943 = vmatmul.mubr.msk.f32.vlgmr.msra.gmra.mrb[0].mxu1 %vm40_vm1, %v28_v5  ;;  %v30_v13 = vld [vmem:[%s1241_s1 + $0x10] sm:$0xff]  ;;  %v31_v14 = vld [vmem:[%s1241_s1 + $0x18] sm:$0xff]  ;;  %s1007_s1 = smov 1   ;;  %v426_v46 = vld [vmem:[%s1244_s4] sm:$0xff] }
   0x7   :  { %140 = vmatprep.mubr.f32.mxu0 %v1005_v4  ;;  %229 = vmatprep.mubr.f32.mxu1 %v1005_v4  ;;  %v1138_v41 = vshrl.u32 %v443_v40, 7  ;;  %v1140_v44 = vand.u32 127, %v443_v40  ;;  %v1152_v51 = vld [vmem:[%s1245_s5] sm:$0xff] }
   0x8   :  { %947 = vmatprep.subr.msk.mxu0 %vm53_vm0, %v38_v9  ;;  %953 = vmatprep.subr.msk.mxu1 %vm53_vm0, %v39_v10 }
   0x9   :  { %948 = vmatpush1.msk.msra.mxu0 %vm53_vm0, %v26_v6  ;;  %954 = vmatpush1.msk.msra.mxu1 %vm53_vm0, %v27_v7  ;;  %v461_v45 = vsub.s32 1, %v1138_v41  ;;  %vm445_vm2 = vcmp.lt.s32.totalorder %v1140_v44, 1  ;;  %v465_v53 = vsub.s32 2, %v1138_v41  ;;  %vm528_vm3 = vcmp.lt.s32.totalorder %v1140_v44, 127 }
   0xa   :  { %938 = vmatmul.mubr.msk.f32.gmra.mrb[2].mxu0 %vm40_vm1, %v29_v11  ;;  %944 = vmatmul.mubr.msk.f32.gmra.mrb[2].mxu1 %vm40_vm1, %v29_v11  ;;  %v469_v58 = vsub.s32 3, %v1138_v41  ;;  %v457_v0 = vsub.s32 0, %v1138_v41  ;;  %v473_v1 = vsub.s32 4, %v1138_v41 }
   0xb   :  { %146 = vmatprep.mubr.f32.mxu0 %v1005_v4  ;;  %235 = vmatprep.mubr.f32.mxu1 %v1005_v4  ;;  %v462_v49 = vrot.slane %v426_v46, %v461_v45  ;;  %v545_v56 = vrot.slane %v1152_v51, %v461_v45  ;;  %v466_v60 = vrot.slane %v426_v46, %v465_v53 }
   0xc   :  { %597 = vperm.xlu0 %976, %v594_v12   ;;  %v549_v3 = vrot.slane %v1152_v51, %v465_v53  ;;  %v470_v7 = vrot.slane %v426_v46, %v469_v58  ;;  %v458_v9 = vrot.slane %v426_v46, %v457_v0 }
   0xe   :  { %939 = vmatmul.mubr.msk.f32.gmra.mrb[4].mxu0 %vm40_vm1, %v30_v13  ;;  %945 = vmatmul.mubr.msk.f32.gmra.mrb[4].mxu1 %vm40_vm1, %v30_v13 }
   0xf   :  { %152 = vmatprep.mubr.f32.mxu0 %v1005_v4  ;;  %241 = vmatprep.mubr.f32.mxu1 %v1005_v4 }
  0x12   :  { %940 = vmatmul.mubr.msk.f32.gmra.mrb[6].mxu0 %vm40_vm1, %v31_v14  ;;  %946 = vmatmul.mubr.msk.f32.gmra.mrb[6].mxu1 %vm40_vm1, %v31_v14 }
  0x13   :  { %312 = vmatprep.mubr.f32.mxu0 %v1005_v4  ;;  %401 = vmatprep.mubr.f32.mxu1 %v1005_v4 }
  0x16   :  { %949 = vmatmul.mubr.msk.f32.vlgmr.msra.gmra.mrb[8].mxu0 %vm40_vm1, %v28_v5  ;;  %955 = vmatmul.mubr.msk.f32.vlgmr.msra.gmra.mrb[8].mxu1 %vm40_vm1, %v28_v5 }
  0x17   :  { %318 = vmatprep.mubr.f32.mxu0 %v1005_v4  ;;  %407 = vmatprep.mubr.f32.mxu1 %v1005_v4 }
  0x1a   :  { %950 = vmatmul.mubr.msk.f32.gmra.mrb[10].mxu0 %vm40_vm1, %v29_v11  ;;  %956 = vmatmul.mubr.msk.f32.gmra.mrb[10].mxu1 %vm40_vm1, %v29_v11 }
  0x1b   :  { %324 = vmatprep.mubr.f32.mxu0 %v1005_v4  ;;  %413 = vmatprep.mubr.f32.mxu1 %v1005_v4 }
  0x1e   :  { %951 = vmatmul.mubr.msk.f32.gmra.mrb[12].mxu0 %vm40_vm1, %v30_v13  ;;  %957 = vmatmul.mubr.msk.f32.gmra.mrb[12].mxu1 %vm40_vm1, %v30_v13  ;;  %v477_v13 = vsub.s32 5, %v1138_v41 }
  0x1f   :  { %330 = vmatprep.mubr.f32.mxu0 %v1005_v4  ;;  %419 = vmatprep.mubr.f32.mxu1 %v1005_v4 }
  0x22   :  { %952 = vmatmul.mubr.msk.f32.gmra.mrb[14].mxu0 %vm40_vm1, %v31_v14  ;;  %958 = vmatmul.mubr.msk.f32.gmra.mrb[14].mxu1 %vm40_vm1, %v31_v14  ;;  %v474_v14 = vrot.slane %v426_v46, %v473_v1 }
  0x23   :  { %685 = vmatprep.mubr.f32.mxu0 %v1005_v4  ;;  %756 = vmatprep.mubr.f32.mxu1 %v1005_v4 }
  0x8b   :  { %v1136_v39 = vpop.permute.xlu0 %597 }
  0xd9   :  { %v136_v15 = vpop.f32.mrb[0].mxu0  ;;  %v225_v16 = vpop.f32.mrb[0].mxu1 }
  0xda   :  { %431 = vrot.lane.b32.xlu1 %v225_v16, %s1007_s1  ;;  %427 = vrot.lane.b32.xlu0 %v136_v15, %s1007_s1  ;;  %v138_v17 = vpop.f32.mrb[1].mxu0  ;;  %v227_v18 = vpop.f32.mrb[1].mxu1  ;;  %v485_v15 = vsub.s32 7, %v1138_v41  ;;  %v481_v16 = vsub.s32 6, %v1138_v41  ;;  %v557_v41 = vrot.slane %v1152_v51, %v473_v1 }
  0xdc   :  { %v482_v40 = vrot.slane %v426_v46, %v481_v16 }
  0xdd   :  { %v1116_v19 = vpop.f32.mrb[2].mxu0  ;;  %v1118_v20 = vpop.f32.mrb[2].mxu1 }
  0xde   :  { %433 = vrot.lane.b32.xlu1 %v227_v18, %s1007_s1  ;;  %429 = vrot.lane.b32.xlu0 %v138_v17, %s1007_s1  ;;  %v144_v21 = vpop.f32.mrb[3].mxu0  ;;  %v1122_v22 = vpop.f32.mrb[3].mxu1  ;;  %v541_v17 = vrot.slane %v1152_v51, %v457_v0 }
  0xe1   :  { %v148_v23 = vpop.f32.mrb[4].mxu0  ;;  %v237_v24 = vpop.f32.mrb[4].mxu1 }
  0xe2   :  { %512 = vrot.lane.b32.xlu1 %v148_v23, %s1008_s13  ;;  %v150_v25 = vpop.f32.mrb[5].mxu0  ;;  %v239_v26 = vpop.f32.mrb[5].mxu1  ;;  %516 = vrot.lane.b32.xlu0 %v237_v24, %s1008_s13 }
  0xe6   :  { %514 = vrot.lane.b32.xlu1 %v150_v25, %s1008_s13 }
  0xe9   :  { %v314_v27 = vpop.f32.mrb[8].mxu0  ;;  %v403_v28 = vpop.f32.mrb[8].mxu1 }
  0xea   :  { %518 = vrot.lane.b32.xlu1 %v239_v26, %s1008_s13  ;;  %435 = vrot.lane.b32.xlu0 %v314_v27, %s1007_s1  ;;  %v316_v29 = vpop.f32.mrb[9].mxu0  ;;  %v405_v30 = vpop.f32.mrb[9].mxu1 }
  0xed   :  { %v1125_v31 = vpop.f32.mrb[10].mxu0  ;;  %v1127_v32 = vpop.f32.mrb[10].mxu1 }
  0xee   :  { %441 = vrot.lane.b32.xlu1 %v405_v30, %s1007_s1  ;;  %439 = vrot.lane.b32.xlu0 %v403_v28, %s1007_s1  ;;  %v1131_v33 = vpop.f32.mrb[11].mxu0  ;;  %v1133_v34 = vpop.f32.mrb[11].mxu1 }
  0xf1   :  { %v326_v35 = vpop.f32.mrb[12].mxu0  ;;  %v415_v36 = vpop.f32.mrb[12].mxu1 }
  0xf2   :  { %437 = vrot.lane.b32.xlu1 %v316_v29, %s1007_s1  ;;  %520 = vrot.lane.b32.xlu0 %v326_v35, %s1008_s13  ;;  %v328_v37 = vpop.f32.mrb[13].mxu0  ;;  %v417_v38 = vpop.f32.mrb[13].mxu1  ;;  %v478_v35 = vrot.slane %v426_v46, %v477_v13 }
  0xf6   :  { %524 = vrot.lane.b32.xlu0 %v415_v36, %s1008_s13  ;;  %522 = vrot.lane.b32.xlu1 %v328_v37, %s1008_s13  ;;  %v553_v36 = vrot.slane %v1152_v51, %v469_v58  ;;  %v565_v58 = vrot.slane %v1152_v51, %v481_v16 }
  0xfa   :  { %526 = vrot.lane.b32.xlu1 %v417_v38, %s1008_s13  ;;  %v486_v38 = vrot.slane %v426_v46, %v485_v15 }
 0x14c   :  { %v432_v42 = vpop.permute.xlu1 %431  ;;  %v428_v43 = vpop.permute.xlu0 %427 }
 0x150   :  { %v434_v47 = vpop.permute.xlu1 %433  ;;  %v430_v48 = vpop.permute.xlu0 %429 }
 0x151   :  { %v452_v50 = vsel %vm445_vm2, %v428_v43, %v430_v48  ;;  %v451_v63 = vsel %vm445_vm2, %v430_v48, %v432_v42  ;;  %v450_v10 = vsel %vm445_vm2, %v432_v42, %v434_v47 }
 0x152   :  { %v496_v54 = vmul.f32 %v462_v49, %v452_v50  ;;  %v497_v11 = vmul.f32 %v466_v60, %v451_v63  ;;  %v498_v26 = vmul.f32 %v470_v7, %v450_v10  ;;  %v608_v7 = vld [vmem:[%s1242_s2] sm:$0xff]  ;;  %s1009_s2 = smov [#allocation2]  }
 0x153   :  { %s927_s18 = sshll.u32 %s1009_s2, 4  ;;  %s928_s18 = int_to_ptr.vmem [resolvable:$true] %s927_s18 }
 0x154   :  { %v1154_v52 = vpop.permute.xlu1 %512  ;;  %v517_v55 = vpop.permute.xlu0 %516  ;;  %v504_v61 = vadd.f32 %v496_v54, %v144_v21  ;;  %v505_v29 = vadd.f32 %v497_v11, %v1118_v20  ;;  %v506_v20 = vadd.f32 %v498_v26, %v1122_v22  ;;  %v569_v22 = vrot.slane %v1152_v51, %v485_v15  ;;  %s981_s19 = scalar_lea.vmem %s928_s18, 1024  ;;  %p986_p1 = scmp.lt.s32.totalorder %s928_s18, %s928_s18 }
 0x155   :  { %p982_p0 = scmp.ne.s32.totalorder %s928_s18, %s981_s19  ;;  %p987_p2 = scmp.lt.s32.totalorder %s981_s19, %s981_s19 }
 0x157   :  { %p988_p3 = por %p987_p2, %p986_p1 }
 0x158   :  { %v515_v57 = vpop.permute.xlu1 %514 }
 0x159   :  { %v534_v59 = vsel %vm528_vm3, %v515_v57, %v517_v55  ;;  %v535_v27 = vsel %vm528_vm3, %v1154_v52, %v515_v57  ;;  %p989_p4 = pnand %p988_p3, %p982_p0 }
 0x15a   :  { %v579_v62 = vmul.f32 %v545_v56, %v534_v59  ;;  %v578_v42 = vmul.f32 %v541_v17, %v535_v27 }
 0x15c   :  { %v587_v2 = vadd.f32 %v579_v62, %v504_v61  ;;  %v519_v5 = vpop.permute.xlu1 %518  ;;  %v436_v6 = vpop.permute.xlu0 %435 }
 0x15d   :  { %v533_v8 = vsel %vm528_vm3, %v517_v55, %v519_v5  ;;  %v449_v21 = vsel %vm445_vm2, %v434_v47, %v436_v6 }
 0x15e   :  { %v601_v12 = vadd.f32 %v1136_v39, %v587_v2  ;;  %v580_v18 = vmul.f32 %v549_v3, %v533_v8  ;;  %v499_v37 = vmul.f32 %v474_v14, %v449_v21 }
 0x160   :  { %v442_v23 = vpop.permute.xlu1 %441  ;;  %v440_v24 = vpop.permute.xlu0 %439  ;;  %v610_v25 = vmax.f32 %v601_v12, 0.0  ;;  %v588_v45 = vadd.f32 %v580_v18, %v505_v29  ;;  %v507_v57 = vadd.f32 %v499_v37, %v1125_v31 }
 0x161   :  { %v453_v28 = vsel %vm445_vm2, %v442_v23, %v428_v43  ;;  %v561_v43 = vrot.slane %v1152_v51, %v477_v13  ;;  %v446_v50 = vsel %vm445_vm2, %v440_v24, %v442_v23 }
 0x162   :  { %v495_v30 = vmul.f32 %v458_v9, %v453_v28  ;;  %621 = vmatprep.subr.mxu0 %v610_v25  ;;  %v602_v59 = vadd.f32 %v1136_v39, %v588_v45  ;;  %v502_v60 = vmul.f32 %v486_v38, %v446_v50 }
 0x164   :  { %v503_v47 = vadd.f32 %v495_v30, %v1116_v19  ;;  %v438_v48 = vpop.permute.xlu1 %437  ;;  %v521_v49 = vpop.permute.xlu0 %520  ;;  %v611_v9 = vmax.f32 %v602_v59, 0.0  ;;  %v510_v13 = vadd.f32 %v502_v60, %v1133_v34 }
 0x165   :  { %v448_v53 = vsel %vm445_vm2, %v436_v6, %v438_v48  ;;  %v532_v46 = vsel %vm528_vm3, %v519_v5, %v521_v49  ;;  %v447_v55 = vsel %vm445_vm2, %v438_v48, %v440_v24 }
 0x166   :  { %v586_v54 = vadd.f32 %v578_v42, %v503_v47  ;;  %v500_v19 = vmul.f32 %v478_v35, %v448_v53  ;;  %v581_v56 = vmul.f32 %v553_v36, %v532_v46  ;;  %v501_v1 = vmul.f32 %v482_v40, %v447_v55 }
 0x168   :  { %v589_v61 = vadd.f32 %v581_v56, %v506_v20  ;;  %v525_v62 = vpop.permute.xlu0 %524  ;;  %v523_v63 = vpop.permute.xlu1 %522  ;;  %v600_v0 = vadd.f32 %v1136_v39, %v586_v54  ;;  %v508_v2 = vadd.f32 %v500_v19, %v1131_v33  ;;  %v509_v14 = vadd.f32 %v501_v1, %v1127_v32 }
 0x169   :  { %v530_v3 = vsel %vm528_vm3, %v523_v63, %v525_v62  ;;  %v531_v31 = vsel %vm528_vm3, %v521_v49, %v523_v63 }
 0x16a   :  { %v582_v5 = vmul.f32 %v557_v41, %v531_v31  ;;  %v583_v51 = vmul.f32 %v561_v43, %v530_v3  ;;  %v609_v6 = vmax.f32 %v600_v0, 0.0  ;;  %v603_v8 = vadd.f32 %v1136_v39, %v589_v61 }
 0x16c   :  { %v590_v10 = vadd.f32 %v582_v5, %v507_v57  ;;  %v591_v11 = vadd.f32 %v583_v51, %v508_v2  ;;  %622 = vmatpush1.msra.mxu0 %v609_v6  ;;  %v527_v33 = vpop.permute.xlu1 %526  ;;  %v612_v12 = vmax.f32 %v603_v8, 0.0 }
 0x16d   :  { %v529_v15 = vsel %vm528_vm3, %v525_v62, %v527_v33  ;;  %v536_v16 = vsel %vm528_vm3, %v527_v33, %v1154_v52  ;;  %959 = vmatmul.mubr.msk.f32.vlgmr.msra.gmra.mrb[6].mxu0 %vm617_vm4, %v608_v7 }
 0x16e   :  { %v604_v17 = vadd.f32 %v1136_v39, %v590_v10  ;;  %v584_v18 = vmul.f32 %v565_v58, %v529_v15  ;;  %v585_v21 = vmul.f32 %v569_v22, %v536_v16  ;;  %692 = vmatprep.subr.mxu1 %v612_v12  ;;  %v605_v23 = vadd.f32 %v1136_v39, %v591_v11 }
 0x16f   :  { %693 = vmatpush1.msra.mxu1 %v611_v9  ;;  %827 = vmatprep.mubr.f32.mxu0 %v1005_v4 }
 0x170   :  { %v613_v32 = vmax.f32 %v604_v17, 0.0  ;;  %v592_v34 = vadd.f32 %v584_v18, %v509_v14  ;;  %v593_v24 = vadd.f32 %v585_v21, %v510_v13  ;;  %960 = vmatmul.mubr.msk.f32.vlgmr.msra.gmra.mrb[6].mxu1 %vm617_vm4, %v608_v7  ;;  %v614_v25 = vmax.f32 %v605_v23, 0.0 }
 0x171   :  { %898 = vmatprep.mubr.f32.mxu1 %v1005_v4 }
 0x172   :  { %v606_v44 = vadd.f32 %v1136_v39, %v592_v34  ;;  %763 = vmatprep.subr.mxu0 %v614_v25  ;;  %v607_v52 = vadd.f32 %v1136_v39, %v593_v24 }
 0x173   :  { %764 = vmatpush1.msra.mxu0 %v613_v32 }
 0x174   :  { %v615_v26 = vmax.f32 %v606_v44, 0.0  ;;  %v616_v27 = vmax.f32 %v607_v52, 0.0  ;;  %961 = vmatmul.mubr.msk.f32.vlgmr.msra.gmra.mrb[14].mxu0 %vm617_vm4, %v608_v7 }
 0x176   :  { %834 = vmatprep.subr.mxu1 %v616_v27 }
 0x177   :  { %835 = vmatpush1.msra.mxu1 %v615_v26 }
 0x178   :  { %962 = vmatmul.mubr.msk.f32.vlgmr.msra.gmra.mrb[14].mxu1 %vm617_vm4, %v608_v7 }
 0x240   :  { %v687_v28 = vpop.f32.mrb[6].mxu0 }
 0x241   :  { %913 = vst [vmem:[#allocation2] sm:$0xff] %v687_v28  ;;  %v689_v29 = vpop.f32.mrb[7].mxu0 }
 0x242   :  { %914 = vst [vmem:[#allocation2 + $0x8] sm:$0xff] %v689_v29 }
 0x243   :  { %v758_v30 = vpop.f32.mrb[6].mxu1 }
 0x244   :  { %915 = vst [vmem:[#allocation2 + $0x10] sm:$0xff] %v758_v30  ;;  %v760_v4 = vpop.f32.mrb[7].mxu1 }
 0x245   :  { %916 = vst [vmem:[#allocation2 + $0x18] sm:$0xff] %v760_v4 }
 0x247   :  { %v829_v35 = vpop.f32.mrb[14].mxu0 }
 0x248   :  { %917 = vst [vmem:[#allocation2 + $0x20] sm:$0xff] %v829_v35  ;;  %v831_v39 = vpop.f32.mrb[15].mxu0 }
 0x249   :  { %918 = vst [vmem:[#allocation2 + $0x28] sm:$0xff] %v831_v39 }
 0x24b   :  { %v900_v36 = vpop.f32.mrb[14].mxu1 }
 0x24c   :  { %919 = vst [vmem:[#allocation2 + $0x30] sm:$0xff] %v900_v36  ;;  %v902_v37 = vpop.f32.mrb[15].mxu1 }
 0x24d   :  { %920 = vst [vmem:[#allocation2 + $0x38] sm:$0xff] %v902_v37 }
 0x24e   :  { %992 = shalt.err (!%p989_p4)
}
 0x24f   :  { %s993_s22 = scalar_lea.hbm %s1246_s6, 1024 }
 0x250   :  { %p994_p5 = scmp.ne.s32.totalorder %s1246_s6, %s993_s22  ;;  %p997_p6 = scmp.lt.u32.totalorder %s993_s22, %s1246_s6 }
 0x252   :  { %p999_p7 = pnand %p997_p6, %p994_p5 }
 0x254   :  { %1002 = shalt.err (!%p999_p7)
}
 0x255   :  { %930 = dma.vmem_to_hbm [thread:$0]  %s928_s18, 1024, %s1246_s6, [#allocation3]  }
 0x256   :  { %1003 = dma.done.wait [#allocation3], 1024  }
 0x257   :  { %1004 = vsyncadd [#allocation3], 4294966272 }
 0x258   :  { %934 = vsyncpa [#allocation3], 1 }

</bundles_post_ra>
